<compile_context>
chip_gen: v6e
topology: v6e:2x2x1
jax: 0.10.0
libtpu: 0.0.40
codegen_flags: <defaults>
</compile_context>

<pallas_src>
import jax
import jax.numpy as jnp
from jax.experimental import pallas as pl
from jax.experimental.pallas import tpu as pltpu

_INV_SQRT2 = 0.7071067811865476


def _gelu_exact(x):
    # PyTorch F.gelu default is the exact erf-based GELU.
    return 0.5 * x * (1.0 + jax.lax.erf(x * _INV_SQRT2))


def convffn_kernel(x_ref, w1_ref, b1_ref, w2_ref, b2_ref, o_ref):
    # x_ref:  (1, 1, D, Nt)   current (batch, group, seq-tile) block
    # w1_ref: (1, rD, D), b1_ref: (1, rD, 1)   VMEM-resident across inner axes
    # w2_ref: (1, D, rD), b2_ref: (1, D, 1)
    x = x_ref[0, 0]                                                  # (D, Nt)
    w1 = w1_ref[0]                                                   # (rD, D)
    b1 = b1_ref[0]                                                   # (rD, 1)
    h = jnp.dot(w1, x, preferred_element_type=jnp.float32) + b1     # (rD, Nt) f32
    h = _gelu_exact(h)
    w2 = w2_ref[0]                                                   # (D, rD)
    b2 = b2_ref[0]                                                   # (D, 1)
    y = jnp.dot(w2, h.astype(w2.dtype), preferred_element_type=jnp.float32) + b2
    o_ref[0, 0] = y.astype(o_ref.dtype)                              # (D, Nt)


def _pick_lane_tile(n, rD):
    """Largest sequence tile that (a) satisfies the lane-tiling rule
    (multiple of 128 that divides N, or the full extent) and (b) keeps the
    f32 intermediate (rD, Nt) within ~32 vregs (128 KiB) to bound spills."""
    if n % 128 != 0:
        return n                       # full-extent block (always legal)
    h_cap = max(128, ((128 * 1024) // (rD * 4)) // 128 * 128)
    cap = min(n, 2048, h_cap)
    best = 128
    t = 128
    while t <= cap:
        if n % t == 0:
            best = t
        t += 128
    return best


def _round_up(v, m):
    return (v + m - 1) // m * m


def conv_ffn(x, w1, b1, w2, b2, *, channels, D, r):
    """x: (B, channels*D, N) (PyTorch NCW layout). Returns (B, channels*D, N)."""
    B, CD, N = x.shape
    assert CD == channels * D
    rD = r * D

    # Pure reshapes (no transposes -> no extra HBM copies outside the kernel).
    xg = x.reshape(B, channels, D, N)
    w1g = w1.reshape(channels, rD, D)       # PyTorch (r*C*D, D, 1), group-major
    b1g = b1.reshape(channels, rD, 1)
    w2g = w2.reshape(channels, D, rD)       # PyTorch (C*D, r*D, 1)
    b2g = b2.reshape(channels, D, 1)

    nt = _pick_lane_tile(N, rD)
    n_tiles = N // nt

    # VMEM estimate: double-buffered x/out tiles + resident weights/biases
    # (last dim pads to 128 lanes, second-to-last to 8 sublanes).
    def _blk_bytes(s0, s1, bytes_per=4):
        return _round_up(s0, 8) * _round_up(s1, 128) * bytes_per

    need = 2 * (2 * _blk_bytes(D, nt)
                + _blk_bytes(rD, D) + _blk_bytes(rD, 1)
                + _blk_bytes(D, rD) + _blk_bytes(D, 1))
    # Raise the scoped VMEM limit with headroom; cap well under v7x's 64 MiB.
    vmem_limit = int(min(max(2 * need, 32 << 20), 56 << 20))

    grid = (channels, B, n_tiles)   # group slowest -> weights stay resident
    out = pl.pallas_call(
        convffn_kernel,
        out_shape=jax.ShapeDtypeStruct((B, channels, D, N), x.dtype),
        grid_spec=pltpu.PrefetchScalarGridSpec(
            num_scalar_prefetch=0,
            grid=grid,
            in_specs=[
                pl.BlockSpec((1, 1, D, nt), lambda g, b, t: (b, g, 0, t)),
                pl.BlockSpec((1, rD, D), lambda g, b, t: (g, 0, 0)),
                pl.BlockSpec((1, rD, 1), lambda g, b, t: (g, 0, 0)),
                pl.BlockSpec((1, D, rD), lambda g, b, t: (g, 0, 0)),
                pl.BlockSpec((1, D, 1), lambda g, b, t: (g, 0, 0)),
            ],
            out_specs=pl.BlockSpec((1, 1, D, nt), lambda g, b, t: (b, g, 0, t)),
        ),
        compiler_params=pltpu.CompilerParams(
            dimension_semantics=("parallel", "parallel", "parallel"),
            vmem_limit_bytes=vmem_limit,
        ),
    )(xg, w1g, b1g, w2g, b2g)

    return out.reshape(B, channels * D, N)


def conv_ffn_reference(x, w1, b1, w2, b2, *, channels, D, r):
    """Pure-JAX reference of the grouped-conv FFN (for correctness check)."""
    B, CD, N = x.shape
    rD = r * D
    xg = x.reshape(B, channels, D, N)
    w1g = w1.reshape(channels, rD, D)
    b1g = b1.reshape(channels, rD, 1)
    w2g = w2.reshape(channels, D, rD)
    b2g = b2.reshape(channels, D, 1)
    h = jnp.einsum("gfd,bgdn->bgfn", w1g, xg) + b1g[None]
    h = _gelu_exact(h)
    y = jnp.einsum("gdf,bgfn->bgdn", w2g, h) + b2g[None]
    return y.reshape(B, channels * D, N)


def _make_params(key, channels, D, r):
    CD, rCD = channels * D, r * channels * D
    kx_unused, k1, kb1, k2, kb2 = jax.random.split(key, 5)
    # PyTorch weight shapes for grouped 1x1 Conv1d: (out, in/groups, 1).
    w1 = jax.random.normal(k1, (rCD, D, 1), dtype=jnp.float32) * 0.1
    b1 = jax.random.normal(kb1, (rCD,), dtype=jnp.float32) * 0.1
    w2 = jax.random.normal(k2, (CD, r * D, 1), dtype=jnp.float32) * 0.1
    b2 = jax.random.normal(kb2, (CD,), dtype=jnp.float32) * 0.1
    return w1, b1, w2, b2


if __name__ == "__main__":
    channels, D, r = 4, 8, 2
    CD = channels * D

    key = jax.random.PRNGKey(0)
    kparams, kx_small, kx_big = jax.random.split(key, 3)
    w1, b1, w2, b2 = _make_params(kparams, channels, D, r)

    # 1) Small toy shape consistent with the module: B=2, N=16 (full-extent block).
    B, N = 2, 16
    x = jax.random.normal(kx_small, (B, CD, N), dtype=jnp.float32)
    y = jax.block_until_ready(conv_ffn(x, w1, b1, w2, b2, channels=channels, D=D, r=r))
    y_ref = conv_ffn_reference(x, w1, b1, w2, b2, channels=channels, D=D, r=r)
    assert y.shape == (B, CD, N)
    assert jnp.allclose(y, y_ref, atol=1e-5, rtol=1e-5), "mismatch vs reference (N=16)"

    # 2) Lane-dense path: N multiple of 128 exercises the tiled sequence axis.
    B2, N2 = 2, 256
    x2 = jax.random.normal(kx_big, (B2, CD, N2), dtype=jnp.float32)
    y2 = jax.block_until_ready(conv_ffn(x2, w1, b1, w2, b2, channels=channels, D=D, r=r))
    y2_ref = conv_ffn_reference(x2, w1, b1, w2, b2, channels=channels, D=D, r=r)
    assert y2.shape == (B2, CD, N2)
    assert jnp.allclose(y2, y2_ref, atol=1e-5, rtol=1e-5), "mismatch vs reference (N=256)"

    print("KERNEL_OK")
</pallas_src>

<mosaic_0001>
module attributes {stable_mosaic.version = 11 : i64} {
  func.func @convffn_kernel(%arg0: i32, %arg1: i32, %arg2: i32, %arg3: memref<1x1x8x16xf32, #tpu.memory_space<vmem>>, %arg4: memref<1x16x8xf32, #tpu.memory_space<vmem>>, %arg5: memref<1x16x1xf32, #tpu.memory_space<vmem>>, %arg6: memref<1x8x16xf32, #tpu.memory_space<vmem>>, %arg7: memref<1x8x1xf32, #tpu.memory_space<vmem>>, %arg8: memref<1x1x8x16xf32, #tpu.memory_space<vmem>>) attributes {dimension_semantics = [#tpu.dimension_semantics<parallel>, #tpu.dimension_semantics<parallel>, #tpu.dimension_semantics<parallel>], iteration_bounds = array<i64: 4, 2, 1>, scalar_prefetch = 0 : i64, scratch_operands = 0 : i64, tpu.core_type = #tpu.core_type<tc>, window_params = [{transform_indices = @transform_0, window_bounds = array<i64: 1, 1, 8, 16>}, {transform_indices = @transform_1, window_bounds = array<i64: 1, 16, 8>}, {transform_indices = @transform_2, window_bounds = array<i64: 1, 16, 1>}, {transform_indices = @transform_3, window_bounds = array<i64: 1, 8, 16>}, {transform_indices = @transform_4, window_bounds = array<i64: 1, 8, 1>}, {transform_indices = @transform_5, window_bounds = array<i64: 1, 1, 8, 16>}]} {
    %c0 = arith.constant 0 : index
    %c0_0 = arith.constant 0 : index
    %c0_1 = arith.constant 0 : index
    %c0_2 = arith.constant 0 : index
    %0 = vector.load %arg3[%c0, %c0_0, %c0_1, %c0_2] : memref<1x1x8x16xf32, #tpu.memory_space<vmem>>, vector<1x1x8x16xf32>
    %1 = vector.shape_cast %0 : vector<1x1x8x16xf32> to vector<8x16xf32>
    %c0_3 = arith.constant 0 : index
    %c0_4 = arith.constant 0 : index
    %c0_5 = arith.constant 0 : index
    %2 = vector.load %arg4[%c0_3, %c0_4, %c0_5] : memref<1x16x8xf32, #tpu.memory_space<vmem>>, vector<1x16x8xf32>
    %3 = vector.shape_cast %2 : vector<1x16x8xf32> to vector<16x8xf32>
    %c0_6 = arith.constant 0 : index
    %c0_7 = arith.constant 0 : index
    %c0_8 = arith.constant 0 : index
    %4 = vector.load %arg5[%c0_6, %c0_7, %c0_8] : memref<1x16x1xf32, #tpu.memory_space<vmem>>, vector<1x16x1xf32>
    %5 = vector.shape_cast %4 : vector<1x16x1xf32> to vector<16x1xf32>
    %cst = arith.constant dense<0.000000e+00> : vector<16x16xf32>
    %6 = tpu.matmul %3, %1, %cst {dimension_numbers = #tpu.dot_dimension_numbers<[1], [0], [0], [1], [0, 0, 1, 1], [], []>} : vector<16x8xf32>, vector<8x16xf32>, vector<16x16xf32> -> vector<16x16xf32>
    %7 = vector.broadcast %5 : vector<16x1xf32> to vector<16x16xf32>
    %8 = arith.addf %6, %7 : vector<16x16xf32>
    %cst_9 = arith.constant 5.000000e-01 : f32
    %9 = vector.broadcast %cst_9 : f32 to vector<16x16xf32>
    %10 = arith.mulf %9, %8 : vector<16x16xf32>
    %cst_10 = arith.constant 0.707106769 : f32
    %11 = vector.broadcast %cst_10 : f32 to vector<16x16xf32>
    %12 = arith.mulf %8, %11 : vector<16x16xf32>
    %13 = math.erf %12 : vector<16x16xf32>
    %cst_11 = arith.constant 1.000000e+00 : f32
    %14 = vector.broadcast %cst_11 : f32 to vector<16x16xf32>
    %15 = arith.addf %14, %13 : vector<16x16xf32>
    %16 = arith.mulf %10, %15 : vector<16x16xf32>
    %c0_12 = arith.constant 0 : index
    %c0_13 = arith.constant 0 : index
    %c0_14 = arith.constant 0 : index
    %17 = vector.load %arg6[%c0_12, %c0_13, %c0_14] : memref<1x8x16xf32, #tpu.memory_space<vmem>>, vector<1x8x16xf32>
    %18 = vector.shape_cast %17 : vector<1x8x16xf32> to vector<8x16xf32>
    %c0_15 = arith.constant 0 : index
    %c0_16 = arith.constant 0 : index
    %c0_17 = arith.constant 0 : index
    %19 = vector.load %arg7[%c0_15, %c0_16, %c0_17] : memref<1x8x1xf32, #tpu.memory_space<vmem>>, vector<1x8x1xf32>
    %20 = vector.shape_cast %19 : vector<1x8x1xf32> to vector<8x1xf32>
    %cst_18 = arith.constant dense<0.000000e+00> : vector<8x16xf32>
    %21 = tpu.matmul %18, %16, %cst_18 {dimension_numbers = #tpu.dot_dimension_numbers<[1], [0], [0], [1], [0, 0, 1, 1], [], []>} : vector<8x16xf32>, vector<16x16xf32>, vector<8x16xf32> -> vector<8x16xf32>
    %22 = vector.broadcast %20 : vector<8x1xf32> to vector<8x16xf32>
    %23 = arith.addf %21, %22 : vector<8x16xf32>
    %c0_19 = arith.constant 0 : index
    %c0_20 = arith.constant 0 : index
    %c0_21 = arith.constant 0 : index
    %c0_22 = arith.constant 0 : index
    %24 = vector.load %arg8[%c0_19, %c0_20, %c0_21, %c0_22] : memref<1x1x8x16xf32, #tpu.memory_space<vmem>>, vector<1x1x8x16xf32>
    %25 = vector.shape_cast %24 : vector<1x1x8x16xf32> to vector<8x16xf32>
    %26 = vector.shape_cast %23 : vector<8x16xf32> to vector<1x1x8x16xf32>
    tpu.vector_store %arg8[%c0_19, %c0_20, %c0_21, %c0_22], %26 {strides = array<i32>} : memref<1x1x8x16xf32, #tpu.memory_space<vmem>>, vector<1x1x8x16xf32>,
    return
  }
  func.func @transform_0(%arg0: i32, %arg1: i32, %arg2: i32) -> (i32, i32, i32, i32) {
    %c0_i32 = arith.constant 0 : i32
    %c0_i32_0 = arith.constant 0 : i32
    return %arg1, %arg0, %c0_i32, %arg2 : i32, i32, i32, i32
  }
  func.func @transform_1(%arg0: i32, %arg1: i32, %arg2: i32) -> (i32, i32, i32) {
    %c0_i32 = arith.constant 0 : i32
    %c0_i32_0 = arith.constant 0 : i32
    %c0_i32_1 = arith.constant 0 : i32
    return %arg0, %c0_i32, %c0_i32_0 : i32, i32, i32
  }
  func.func @transform_2(%arg0: i32, %arg1: i32, %arg2: i32) -> (i32, i32, i32) {
    %c0_i32 = arith.constant 0 : i32
    %c0_i32_0 = arith.constant 0 : i32
    %c0_i32_1 = arith.constant 0 : i32
    return %arg0, %c0_i32, %c0_i32_0 : i32, i32, i32
  }
  func.func @transform_3(%arg0: i32, %arg1: i32, %arg2: i32) -> (i32, i32, i32) {
    %c0_i32 = arith.constant 0 : i32
    %c0_i32_0 = arith.constant 0 : i32
    %c0_i32_1 = arith.constant 0 : i32
    return %arg0, %c0_i32, %c0_i32_0 : i32, i32, i32
  }
  func.func @transform_4(%arg0: i32, %arg1: i32, %arg2: i32) -> (i32, i32, i32) {
    %c0_i32 = arith.constant 0 : i32
    %c0_i32_0 = arith.constant 0 : i32
    %c0_i32_1 = arith.constant 0 : i32
    return %arg0, %c0_i32, %c0_i32_0 : i32, i32, i32
  }
  func.func @transform_5(%arg0: i32, %arg1: i32, %arg2: i32) -> (i32, i32, i32, i32) {
    %c0_i32 = arith.constant 0 : i32
    %c0_i32_0 = arith.constant 0 : i32
    return %arg1, %arg0, %c0_i32, %arg2 : i32, i32, i32, i32
  }
}

</mosaic_0001>

<bundles_post_ra>
// kernel: tpu_custom_call.1
= control target key start
LH: loop header
LB: loop body
LE: loop exit
PB: predicated region body
PF: predicated region fallthrough
CT: control target
= control target key end

     0   :  { %10 = vsyncpa [#allocation3], 0  ;;  %s1080_s0 = inlined_call_operand.vmem [shape: f32[2,4,8,16], index: 0, kind: input, shape index: {}]   ;;  %s1081_s1 = inlined_call_operand.vmem [shape: f32[4,16,8], index: 1, kind: input, shape index: {}]   ;;  %s1082_s2 = inlined_call_operand.vmem [shape: f32[4,16,1], index: 2, kind: input, shape index: {}]   ;;  %s1083_s3 = inlined_call_operand.vmem [shape: f32[4,8,16], index: 3, kind: input, shape index: {}]   ;;  %s1084_s4 = inlined_call_operand.vmem [shape: f32[4,8,1], index: 4, kind: input, shape index: {}]   ;;  %s1085_s5 = inlined_call_operand.hbm [shape: f32[2,4,8,16], index: 5, kind: output, shape index: {}]  }
   0x1   :  { %12 = vsyncpa [#allocation3 + $0x1], 0  ;;  %s931_s18 = smov 0   ;;  %s933_s19 = smov 0  }
   0x2   :  { %s935_s20 = smov 0   ;;  %s937_s21 = smov 0  }
   0x3   :  { %s939_s22 = smov 0   ;;  %s941_s23 = smov 0  }
   0x4   :  { %s943_s24 = smov 0   ;;  %s945_s25 = smov 0  }
   0x5 LB: > { %1089 = sst [smem:[#allocation5_spill]] %s891_s24  ;;  %s681_s26 = sadd.s32 4294967295, %s895_s25   ;;  %s895_s25 = sphi %s945_s25, %s18_s25   ;;  %s891_s24 = sphi %s943_s24, %s1096_s24   ;;  %s887_s23 = sphi %s941_s23, %s1101_s23   ;;  %s883_s22 = sphi %s939_s22, %s1094_s22   ;;  %s879_s21 = sphi %s937_s21, %s1100_s21   ;;  %s875_s20 = sphi %s935_s20, %s1099_s20   ;;  %s871_s19 = sphi %s933_s19, %s1098_s19   ;;  %s867_s18 = sphi %s931_s18, %s1097_s18  }
   0x6   : > { %s682_s27 = sadd.s32 4294967294, %s895_s25   ;;  %s33_s28 = sadd.s32 1, %s887_s23 }
   0x7   : > { %p35_p0 = scmp.ge.s32.totalorder %s33_s28, 2  ;;  %s37_s29 = sadd.s32 1, %s891_s24 }
   0x8   : > { %p192_p1 = scmp.ne.s32.totalorder %s875_s20, %s871_s19  ;;  %p193_p2 = scmp.eq.s32.totalorder %s681_s26, 7 }
   0x9   : > { %s1103_s28 = smov (%p35_p0, %s33_s28), 0  ;;  %s1105_s29 = smov (!%p35_p0, %s37_s29), %s891_s24 }
   0xa   : > { %1090 = sst [smem:[#allocation6_spill]] %s1103_s28  ;;  %s175_s30 = ssub.s32 %s887_s23, %s1103_s28 }
   0xb   : > { %p982_p3 = por %p193_p2, %p192_p1  ;;  %p39_p4 = scmp.ge.s32.totalorder %s1105_s29, 4 }
   0xc   : > { %p198_p5 = scmp.ne.s32.totalorder %s871_s19, %s867_s18  ;;  %p199_p6 = scmp.eq.s32.totalorder %s682_s27, 7 }
   0xd   : > { %p685_p7 = scmp.ge.s32.totalorder %s895_s25, 1  ;;  %s1107_s29 = smov (%p39_p4, %s1105_s29), 0 }
   0xe   : > { %1092 = sst [smem:[#allocation7_spill]] %s1107_s29  ;;  %p991_p8 = por %p199_p6, %p198_p5 }
   0xf   : > { %p261_p9 = scmp.lt.s32.totalorder %s895_s25, 9  ;;  %s176_s8 = ssub.s32 %s891_s24, %s1107_s29 }
  0x10   : > { %s182_s9 = sadd.s32 1, %s875_s20  ;;  %s177_s10 = sor.u32 %s176_s8, %s175_s30 }
  0x11   : > { %p262_p10 = pnand %p685_p7, %p261_p9  ;;  %p180_p11 = scmp.eq.s32.totalorder %s177_s10, 0 }
  0x12   : > { %p313_p12 = scmp.lt.s32.totalorder (!%p262_p10), %s879_s21, 1  ;;  %p315_p13 = scmp.lt.s32.totalorder (!%p262_p10), %s883_s22, 3 }
  0x13   : > { %s1000_s11 = scalar_select %p180_p11, %s875_s20, %s182_s9  }
  0x14   : > { %265 = sbr.rel (%p262_p10) target bundleno = 460 (0x1cc), region = 40  ;;  %s699_s26 = sshll.u32 (!%p262_p10), %s879_s21, 2 }
  0x15   : > { %s544_s27 = sadd.s32 (!%p262_p10), %s883_s22, %s699_s26 }
  0x19   : > { %v897_v0 = vmov 0   ;;  %s314_s12 = scalar_select %p313_p12, %s879_s21, 1  ;;  %vm357_vm0 = vcmask 64512   ;;  %v898_v6 = vmov 0.0   ;;  %vm899_vm1 = vmmov 0  }
  0x1a   : > { %797 = vset.pattern.permute.xlu0 %v897_v0  ;;  %798 = vset.pattern.permute.xlu1 %v897_v0  ;;  %s1006_s13 = scalar_select %p315_p13, %s883_s22, 3  ;;  %vm456_vm2 = vcmask 130048  }
  0x1b   : > { %s687_s14 = sshll.u32 %s314_s12, 2  ;;  %716 = vmatprep.subr.mxu1 %v898_v6  ;;  %720 = vmatprep.mubr.msk.f32.mxu1 %vm899_vm1, %v898_v6  ;;  %s900_s21 = smov [#allocation2]  }
  0x1c   : > { %s321_s15 = sadd.s32 %s687_s14, %s1006_s13  ;;  %s703_s16 = sshll.u32 %s1006_s13, 4 }
  0x1d   : > { %s688_s17 = sshll.u32 %s321_s15, 3  ;;  %s328_s30 = scalar_lea.vmem %s1081_s1, %s703_s16 }
  0x1e   : > { %s323_s10 = scalar_lea.vmem %s1080_s0, %s688_s17  ;;  %v343_v1 = vld [vmem:[%s328_s30] sm:$0xff]  ;;  %s333_s24 = scalar_lea.vmem %s1082_s2, %s703_s16  ;;  %v344_v3 = vld [vmem:[%s328_s30 + $0x8] sm:$0xff] }
  0x1f   : > { %v342_v2 = vld [vmem:[%s323_s10] sm:$0xff]  ;;  %713 = vmatprep.mubr.msk.f32.mxu0 %vm357_vm0, %v343_v1  ;;  %v346_v4 = vld [vmem:[%s333_s24 + $0x8] sm:$0xff]  ;;  %s693_s12 = sshll.u32 %s1006_s13, 3  ;;  %s310_s16 = sand.u32 1, %s871_s19  }
  0x20   : > { %711 = vmatprep.subr.mxu0 %v342_v2  ;;  %354 = vperm.xlu0 %797, %v346_v4   ;;  %v345_v5 = vld [vmem:[%s333_s24] sm:$0xff]  ;;  %s341_s28 = scalar_lea.vmem %s1084_s4, %s693_s12  ;;  %s337_s13 = scalar_lea.vmem %s1083_s3, %s693_s12 }
  0x21   : > { %712 = vmatpush3.msra.mxu0 %v342_v2  ;;  %v450_v7 = vld [vmem:[%s341_s28] sm:$0xff]  ;;  %s686_s17 = sshll.u32 %s310_s16, 3  ;;  %s700_s30 = sshll.u32 %s544_s27, 7 }
  0x22   : > { %714 = vmatmul.mubr.msk.f32.vlgmr.msra.gmra.mxu0 %vm357_vm0, %v344_v3  ;;  %453 = vperm.xlu1 %798, %v450_v7   ;;  %v449_v24 = vld [vmem:[%s337_s13] sm:$0xff]  ;;  %s312_s8 = scalar_lea.vmem [#allocation2], %s686_s17  ;;  %s1033_s14 = scalar_lea.hbm %s1085_s5, %s700_s30 }
  0x23   : > { %s548_s9 = sshll.u32 %s312_s8, 4  ;;  %s532_s15 = scalar_lea.sflag [#allocation3], %s310_s16  ;;  %s549_s9 = int_to_ptr.vmem [resolvable:$true] %s548_s9 }
  0x24   : > { %349 = vperm.xlu0 %797, %v345_v5   ;;  %s803_s28 = scalar_lea.vmem %s549_s9, 128  ;;  %s807_s22 = sshll.u32 %s900_s21, 4  ;;  %s808_s22 = int_to_ptr.vmem [resolvable:$false] %s807_s22 }
  0x25   : > { %p804_p0 = scmp.ne.s32.totalorder %s549_s9, %s803_s28  ;;  %s809_s24 = scalar_lea.vmem %s808_s22, 256 }
  0x26   : > { %p810_p4 = scmp.lt.s32.totalorder %s549_s9, %s808_s22  ;;  %p811_p5 = scmp.lt.s32.totalorder %s809_s24, %s803_s28 }
  0x27   : > { %p805_p1 = pnand %p804_p0, %p982_p3 }
  0x28   : > { %p812_p6 = por %p811_p5, %p810_p4 }
  0x29   : > { %p806_p2 = pneg %p805_p1 }
  0x2b   : > { %p813_p7 = pnand %p812_p6, %p806_p2 }
  0x9b   : > { %v355_v8 = vpop.permute.xlu0 %354 }
  0x9d   : > { %v454_v25 = vpop.permute.xlu1 %453 }
  0x9f   : > { %v350_v11 = vpop.permute.xlu0 %349 }
  0xe2   : > { %v715_v9 = vpop.f32.mrf.mxu0 }
  0xe3   : > { %v436_v10 = vadd.f32 %v715_v9, %v355_v8 }
  0xe4   : > { %v430_v12 = vpop.f32.mrf.mxu0 }
  0xe5   : > { %v442_v13 = vmul.f32 0.70710677, %v436_v10  ;;  %v431_v14 = vadd.f32 %v430_v12, %v350_v11  ;;  %v440_v17 = vmul.f32 0.5, %v436_v10 }
  0xe7   : > { %799 = verf.f32 %v442_v13  ;;  %v441_v15 = vmul.f32 0.70710677, %v431_v14  ;;  %v439_v20 = vmul.f32 0.5, %v431_v14 }
  0xe9   : > { %801 = verf.f32 %v441_v15 }
  0xf4   : > { %v800_v16 = vpop.eup %799 }
  0xf5   : > { %v446_v18 = vadd.f32 1.0, %v800_v16 }
  0xf6   : > { %v802_v19 = vpop.eup %801 }
  0xf7   : > { %v448_v21 = vmul.f32 %v446_v18, %v440_v17  ;;  %v445_v22 = vadd.f32 1.0, %v802_v19 }
  0xf9   : > { %717 = vmatpush3.msra.mxu1 %v448_v21  ;;  %v447_v23 = vmul.f32 %v445_v22, %v439_v20 }
  0xfa   : > { %718 = vmatprep.subr.mxu1 %v898_v6 }
  0xfb   : > { %719 = vmatpush3.msra.mxu1 %v447_v23 }
  0xfc   : > { %721 = vmatmul.mubr.msk.f32.vlgmr.msra.gmra.mxu1 %vm456_vm2, %v449_v24 }
 0x1bc   : > { %v526_v26 = vpop.f32.mrf.mxu1 }
 0x1bd   : > { %v527_v27 = vadd.f32 %v526_v26, %v454_v25 }
 0x1be   : > { %v722_v28 = vpop.f32.mrf.mxu1 }
 0x1bf   : > { %530 = vst.msk [vmem:[%s312_s8] sm:$0xff] %vm456_vm2, %v527_v27 }
 0x1c0   : > { %816 = shalt.err (!%p813_p7)
}
 0x1c1   : > { %s817_s29 = scalar_lea.hbm %s1033_s14, 128  ;;  %s821_s17 = scalar_lea.hbm %s1085_s5, 1024 }
 0x1c2   : > { %p818_p9 = scmp.ne.s32.totalorder %s1033_s14, %s817_s29  ;;  %p822_p12 = scmp.lt.s32.totalorder %s1033_s14, %s1085_s5 }
 0x1c3   : > { %p823_p13 = scmp.lt.s32.totalorder %s821_s17, %s817_s29 }
 0x1c4   : > { %p819_p10 = pnand %p818_p9, %p982_p3 }
 0x1c5   : > { %p824_p0 = por %p823_p13, %p822_p12 }
 0x1c6   : > { %p820_p11 = pneg %p819_p10 }
 0x1c8   : > { %p825_p1 = pnand %p824_p0, %p820_p11 }
 0x1ca   : > { %828 = shalt.err (!%p825_p1)
}
 0x1cb   : > { %723 = dma.vmem_to_hbm [thread:$0]  (%p982_p3), %s549_s9, 128, %s1033_s14, %s532_s15  }
 0x1cc PF: > { %p729_p2 = scmp.ge.s32.totalorder %s895_s25, 2  ;;  %s560_s30 = sand.u32 1, %s867_s18  }
 0x1cd   : > { %s561_s8 = scalar_lea.sflag [#allocation3], %s560_s30 }
 0x1ce   : > { %p726_p4 = pnand %p729_p2, %p991_p8 }
 0x1d0   : > { %p727_p5 = pneg %p726_p4 }
 0x1d2   : > { %862 = dma.done.wait (%p727_p5), %s561_s8, 128  }
 0x1d3   : > { %864 = vsyncadd (%p727_p5), %s561_s8, 4294967168  ;;  %s18_s25 = sadd.s32 1, %s895_s25   ;;  %s1094_s22 = sld [smem:[#allocation5_spill]] }
 0x1d4   : > { %p15_p6 = scmp.ge.s32.totalorder %s18_s25, 10   ;;  %s1095_s6 = sld [smem:[#allocation6_spill]] }
 0x1d5   : > { %s1096_s24 = sld [smem:[#allocation7_spill]]  ;;  %s1097_s18 = smov %s871_s19 }
 0x1d6   : > { %s1098_s19 = smov %s875_s20  ;;  %s1099_s20 = smov %s1000_s11 }
 0x1d7   : > { %s1100_s21 = smov %s887_s23  ;;  %17 = sbr.rel (!%p15_p6) target bundleno = 5 (0x5), region = 87 }
 0x1da   : > { %s1101_s23 = smov %s1095_s6 }
 0x1dc   :  { %566 = vsyncpa [#allocation3], 1 }
 0x1dd   :  { %568 = vsyncpa [#allocation3 + $0x1], 1 }

</bundles_post_ra>
